<compile_context>
chip_gen: v5e
topology: v5e:2x2
jax: 0.10.0
libtpu: 0.0.40
codegen_flags: <defaults>
</compile_context>

<pallas_src>
import jax
import jax.numpy as jnp
from jax.experimental import pallas as pl
from jax.experimental.pallas import tpu as pltpu


LANES = 128
TILE_BYTES = 4 * 1024 * 1024        # ~4 MiB per tile, in the native dtype
MIN_PALLAS_BYTES = 256 * 1024       # below this, plain jnp is faster
_MIB = 1024 * 1024


def _sublane_multiple(dtype):
    # Sublane packing of the native dtype: f32 -> 8, bf16 -> 16, int8/fp8 -> 32.
    itemsize = jnp.dtype(dtype).itemsize
    return 8 * max(1, 4 // itemsize)


def _learnable_sigmoid_kernel(w_ref, x_ref, o_ref):
    # w_ref: SMEM (1,) f32 scalar weight
    # x_ref/o_ref: VMEM tiles of shape (tile_rows, lanes), native dtype
    w = jnp.maximum(w_ref[0], jnp.float32(0.0))      # relu(weight), scalar unit
    x = x_ref[...].astype(jnp.float32)                # compute in f32 vregs
    # Exact sigmoid (exp + divide).  On v7x with bf16 I/O the single EUP slot
    # could become binding; pl.reciprocal(approx=True) + one NR step is the
    # escape hatch but changes ULP-level results, so keep the exact form.
    y = 1.0 / (1.0 + jnp.exp(-w * x))
    o_ref[...] = y.astype(o_ref.dtype)                # store in native dtype


def learnable_sigmoid(x, weight, *, tile_bytes=TILE_BYTES,
                      min_pallas_bytes=MIN_PALLAS_BYTES,
                      input_buffers=2, donate_input=False):
    """1/(1+exp(-relu(weight)*x)) elementwise via a Pallas TPU kernel.

    x:      any-shape floating array (e.g. NCHW), any float dtype
    weight: array of shape (1,)

    donate_input=True adds a hard input_output_aliases request (output written
    into x's buffer).  Only enable when x is genuinely dead after this call --
    the caller's buffer WILL be clobbered otherwise.
    """
    orig_shape = x.shape
    dtype = x.dtype
    n = x.size
    itemsize = jnp.dtype(dtype).itemsize

    # ---- small-input fast path (launch/DMA-priming dominated sizes) --------
    if n * itemsize < min_pallas_bytes:
        w = jnp.maximum(weight[0].astype(jnp.float32), 0.0)
        return (1.0 / (1.0 + jnp.exp(-w * x.astype(jnp.float32)))).astype(dtype)

    sub = _sublane_multiple(dtype)

    # ---- lane width: widest factor that divides n (free reshape) -----------
    lanes = LANES
    pad_elems = 0
    if n % LANES == 0:
        for cand in (1024, 512, 256):
            if n % cand == 0 and n // cand >= sub:
                lanes = cand
                break
    else:
        # Ragged fallback: pad to a 128-lane multiple in HBM (one extra pass),
        # slice it off afterwards.  Rare for real NN tensors (n % 128 == 0).
        # TODO(synk): replace with an in-kernel masked tail (pl.ANY + manual
        # DMA + pltpu.store(mask=...)) to remove the pad/slice HBM passes.
        pad_elems = pl.cdiv(n, LANES) * LANES - n

    rows = (n + pad_elems) // lanes

    # ---- tile rows: byte budget, >= 4 even grid steps, sublane aligned -----
    tr_cap = max(sub, (tile_bytes // (lanes * itemsize)) // sub * sub)
    if rows <= sub:
        tr = rows                                  # tiny slab: one full block
    else:
        g = max(pl.cdiv(rows, tr_cap), 4)          # >= 2 steps per v7x TC
        if g % 2:
            g += 1                                 # balanced megacore split
        tr = min(tr_cap, max(sub, pl.cdiv(pl.cdiv(rows, g), sub) * sub))
    grid = (pl.cdiv(rows, tr),)                    # partial last block is
                                                   # masked by Pallas on store

    x_flat = jnp.ravel(x)                          # free for contiguous input
    if pad_elems:
        x_flat = jnp.pad(x_flat, (0, pad_elems))
    x2d = x_flat.reshape(rows, lanes)

    # Explicit scoped-VMEM budget: buffers actually needed + headroom, never
    # below 32 MiB, capped at 48 MiB (safe on v7x's 64 MiB physical VMEM).
    tile_actual = tr * lanes * itemsize
    vmem_limit = int(min(48 * _MIB,
                         max(32 * _MIB,
                             (input_buffers + 2) * tile_actual + 8 * _MIB)))

    x_spec_kwargs = {}
    if input_buffers != 2:
        # Optional deeper input pipeline (sweepable on v7x if DMA waits show
        # up in the bundle dump); default double-buffering otherwise.
        x_spec_kwargs["pipeline_mode"] = pl.Buffered(input_buffers)

    call_kwargs = {}
    if donate_input:
        # Elementwise 1:1 map -> output may reuse x's buffer.
        call_kwargs["input_output_aliases"] = {1: 0}

    out2d = pl.pallas_call(
        _learnable_sigmoid_kernel,
        out_shape=jax.ShapeDtypeStruct((rows, lanes), dtype),
        grid_spec=pltpu.PrefetchScalarGridSpec(
            num_scalar_prefetch=0,
            grid=grid,
            in_specs=[
                pl.BlockSpec(memory_space=pltpu.SMEM),               # weight
                pl.BlockSpec((tr, lanes), lambda i: (i, 0),          # x tile
                             **x_spec_kwargs),
            ],
            out_specs=pl.BlockSpec((tr, lanes), lambda i: (i, 0)),
        ),
        compiler_params=pltpu.CompilerParams(
            dimension_semantics=("parallel",),
            vmem_limit_bytes=vmem_limit),
        **call_kwargs,
    )(weight.astype(jnp.float32), x2d)

    if pad_elems:
        return out2d.reshape(-1)[:n].reshape(orig_shape)
    return out2d.reshape(orig_shape)


def learnable_sigmoid_ref(x, weight):
    w = jnp.maximum(weight[0].astype(jnp.float32), 0.0)
    return (1.0 / (1.0 + jnp.exp(-w * x.astype(jnp.float32)))).astype(x.dtype)


if __name__ == "__main__":
    key = jax.random.PRNGKey(0)
    k1, k2, k3 = jax.random.split(key, 3)

    # Deterministic parameter init matching reset_parameters(): weight = 1.0
    weight = jnp.ones((1,), dtype=jnp.float32)

    # 1) Spec-sized NCHW input (2, 4, 16, 16).  At 8 KiB this takes the
    #    small-input fast path by default; also force it through the Pallas
    #    kernel to verify the kernel at the spec shape.
    x = jax.random.normal(k1, (2, 4, 16, 16), dtype=jnp.float32)
    ref = learnable_sigmoid_ref(x, weight)

    out_fast = jax.block_until_ready(learnable_sigmoid(x, weight))
    assert out_fast.shape == x.shape and out_fast.dtype == x.dtype
    assert jnp.allclose(out_fast, ref, atol=1e-6, rtol=1e-6)

    out_pallas = jax.block_until_ready(
        learnable_sigmoid(x, weight, min_pallas_bytes=0))
    assert out_pallas.shape == x.shape and out_pallas.dtype == x.dtype
    assert jnp.allclose(out_pallas, ref, atol=1e-6, rtol=1e-6)

    # 2) Larger f32 slab (512 KiB) exercising the default Pallas path
    #    (4 grid steps -> 2 per v7x TensorCore, lane-dense 1024-wide tiles).
    xb = jax.random.normal(k2, (2, 8, 64, 128), dtype=jnp.float32)
    outb = jax.block_until_ready(learnable_sigmoid(xb, weight))
    refb = learnable_sigmoid_ref(xb, weight)
    assert outb.shape == xb.shape and outb.dtype == xb.dtype
    assert jnp.allclose(outb, refb, atol=1e-6, rtol=1e-6)

    # 3) Ragged (non-128-multiple) bf16 input: exercises native-bf16 HBM I/O
    #    and the padded-tail fallback when forced through Pallas.
    xr = jax.random.normal(k3, (3, 5, 7, 11), dtype=jnp.bfloat16)
    refr = learnable_sigmoid_ref(xr, weight)
    outr = jax.block_until_ready(
        learnable_sigmoid(xr, weight, min_pallas_bytes=0))
    assert outr.shape == xr.shape and outr.dtype == xr.dtype
    assert jnp.allclose(outr.astype(jnp.float32), refr.astype(jnp.float32),
                        atol=2e-2, rtol=2e-2)

    print("KERNEL_OK")
</pallas_src>

<mosaic_0001>
module attributes {stable_mosaic.version = 11 : i64} {
  func.func @_learnable_sigmoid_kernel(%arg0: i32, %arg1: memref<1xf32, #tpu.memory_space<smem>>, %arg2: memref<8x256xf32, #tpu.memory_space<vmem>>, %arg3: memref<8x256xf32, #tpu.memory_space<vmem>>) attributes {dimension_semantics = [#tpu.dimension_semantics<parallel>], iteration_bounds = array<i64: 1>, scalar_prefetch = 0 : i64, scratch_operands = 0 : i64, tpu.core_type = #tpu.core_type<tc>, window_params = [{transform_indices = @transform_0, window_bounds = array<i64: 1>}, {transform_indices = @transform_1, window_bounds = array<i64: 8, 256>}, {transform_indices = @transform_2, window_bounds = array<i64: 8, 256>}]} {
    %c0 = arith.constant 0 : index
    %0 = memref.load %arg1[%c0] : memref<1xf32, #tpu.memory_space<smem>>
    %cst = arith.constant 0.000000e+00 : f32
    %1 = arith.maximumf %0, %cst : f32
    %c0_0 = arith.constant 0 : index
    %c0_1 = arith.constant 0 : index
    %2 = vector.load %arg2[%c0_0, %c0_1] : memref<8x256xf32, #tpu.memory_space<vmem>>, vector<8x256xf32>
    %cst_2 = arith.constant 0.000000e+00 : f32
    %3 = arith.subf %cst_2, %1 : f32
    %4 = vector.broadcast %3 : f32 to vector<8x256xf32>
    %5 = arith.mulf %4, %2 : vector<8x256xf32>
    %6 = math.exp %5 : vector<8x256xf32>
    %cst_3 = arith.constant 1.000000e+00 : f32
    %7 = vector.broadcast %cst_3 : f32 to vector<8x256xf32>
    %8 = arith.addf %7, %6 : vector<8x256xf32>
    %cst_4 = arith.constant 1.000000e+00 : f32
    %9 = vector.broadcast %cst_4 : f32 to vector<8x256xf32>
    %10 = arith.divf %9, %8 : vector<8x256xf32>
    %c0_5 = arith.constant 0 : index
    %c0_6 = arith.constant 0 : index
    %11 = vector.load %arg3[%c0_5, %c0_6] : memref<8x256xf32, #tpu.memory_space<vmem>>, vector<8x256xf32>
    tpu.vector_store %arg3[%c0_5, %c0_6], %10 {strides = array<i32>} : memref<8x256xf32, #tpu.memory_space<vmem>>, vector<8x256xf32>,
    return
  }
  func.func @transform_0(%arg0: i32) -> i32 {
    %c0_i32 = arith.constant 0 : i32
    %c0_i32_0 = arith.constant 0 : i32
    return %c0_i32 : i32
  }
  func.func @transform_1(%arg0: i32) -> (i32, i32) {
    %c0_i32 = arith.constant 0 : i32
    %c0_i32_0 = arith.constant 0 : i32
    return %arg0, %c0_i32 : i32, i32
  }
  func.func @transform_2(%arg0: i32) -> (i32, i32) {
    %c0_i32 = arith.constant 0 : i32
    %c0_i32_0 = arith.constant 0 : i32
    return %arg0, %c0_i32 : i32, i32
  }
}

</mosaic_0001>

<bundles_post_ra>
// kernel: tpu_custom_call.1
= control target key start
LH: loop header
LB: loop body
LE: loop exit
PB: predicated region body
PF: predicated region fallthrough
CT: control target
= control target key end

     0   :  { %8 = vsyncpa [#allocation4], 0  ;;  %s180_s0 = inlined_call_operand.<no memory space> [shape: f32[1], index: 0, kind: input, shape index: {}]   ;;  %s181_s1 = inlined_call_operand.hbm [shape: f32[8,256], index: 1, kind: input, shape index: {}]   ;;  %s182_s2 = inlined_call_operand.hbm [shape: f32[8,256], index: 2, kind: output, shape index: {}]  }
   0x1   :  { %9 = vsyncpa [#allocation5], 0  ;;  %s17_s11 = sshll.u32 %s181_s1, 4  ;;  %s153_s12 = smov [#allocation3]   ;;  %s18_s11 = int_to_ptr.hbm [resolvable:$true] %s17_s11 }
   0x2   :  { %s19_s13 = sshll.u32 %s153_s12, 4  ;;  %s20_s13 = int_to_ptr.vmem [resolvable:$true] %s19_s13 }
   0x3   :  { %22 = dma.hbm_to_vmem [thread:$0]  %s18_s11, 256, %s20_s13, [#allocation4]  }
   0x4   :  { %149 = dma.done.wait [#allocation4], 256  }
   0x5   :  { %150 = vsyncadd [#allocation4], 4294967040  ;;  %s154_s14 = smov 0.0   ;;  %v29_v1 = vld [vmem:[#allocation3] sm:$0xff]  ;;  %v30_v2 = vld [vmem:[#allocation3 + $0x8] sm:$0xff]  ;;  %s80_s21 = sshll.u32 %s182_s2, 4  ;;  %s81_s21 = int_to_ptr.hbm [resolvable:$true] %s80_s21 }
   0x6   :  { %s28_s17 = smax.f32 %s154_s14, %s180_s0  ;;  %s155_s0 = smov [#allocation6]  }
   0x7   :  { %s31_s18 = ssub.f32 0.0, %s28_s17  ;;  %s78_s1 = sshll.u32 %s155_s0, 4  ;;  %s79_s1 = int_to_ptr.vmem [resolvable:$true] %s78_s1 }
   0x9   :  { %v32_v0 = vstv %s31_s18 }
   0xa   :  { %v33_v3 = vmul.f32 %v32_v0, %v29_v1  ;;  %v34_v4 = vmul.f32 %v32_v0, %v30_v2 }
   0xc   :  { %v35_v5 = vmul.f32 1.442695, %v33_v3  ;;  %v37_v6 = vmul.f32 1.442695, %v34_v4 }
   0xe   :  { %93 = vpow2.f32 %v35_v5 }
   0xf   :  { %95 = vpow2.f32 %v37_v6 }
  0x14   :  { %v94_v7 = vpop.eup %93 }
  0x15   :  { %v96_v8 = vpop.eup %95  ;;  %v39_v9 = vadd.f32 1.0, %v94_v7 }
  0x16   :  { %v40_v10 = vadd.f32 1.0, %v96_v8 }
  0x17   :  { %97 = vrcp.f32 %v39_v9  ;;  %vm46_vm0 = vweird.f32 %v39_v9  ;;  %v52_v14 = vand.u32 2147483648, %v39_v9  ;;  %v50_v17 = vand.u32 2147483647, %v39_v9 }
  0x18   :  { %99 = vrcp.f32 %v40_v10  ;;  %v67_v18 = vand.u32 2147483648, %v40_v10  ;;  %vm61_vm2 = vweird.f32 %v40_v10  ;;  %v65_v20 = vand.u32 2147483647, %v40_v10 }
  0x19   :  { %v53_v22 = vor.u32 1.1754944e-38, %v52_v14  ;;  %vm51_vm5 = vcmp.eq.f32.partialorder %v50_v17, 8.507059e+37 }
  0x1a   :  { %v68_v25 = vor.u32 1.1754944e-38, %v67_v18  ;;  %vm66_vm7 = vcmp.eq.f32.partialorder %v65_v20, 8.507059e+37 }
  0x1d   :  { %v98_v11 = vpop.eup %97 }
  0x1e   :  { %v100_v12 = vpop.eup %99  ;;  %v42_v13 = vmul.f32 %v98_v11, %v39_v9  ;;  %vm47_vm1 = vweird.f32 %v98_v11 }
  0x1f   :  { %v57_v15 = vmul.f32 %v100_v12, %v40_v10  ;;  %vm62_vm3 = vweird.f32 %v100_v12  ;;  %vm48_vm4 = vmor %vm46_vm0, %vm47_vm1 }
  0x20   :  { %v43_v16 = vsub.f32 1.0, %v42_v13  ;;  %vm63_vm6 = vmor %vm61_vm2, %vm62_vm3 }
  0x21   :  { %v58_v19 = vsub.f32 1.0, %v57_v15 }
  0x22   :  { %v44_v21 = vmul.f32 %v98_v11, %v43_v16 }
  0x23   :  { %v59_v23 = vmul.f32 %v100_v12, %v58_v19 }
  0x24   :  { %v45_v24 = vadd.f32 %v98_v11, %v44_v21 }
  0x25   :  { %v60_v26 = vadd.f32 %v100_v12, %v59_v23 }
  0x26   :  { %v49_v27 = vsel %vm48_vm4, %v98_v11, %v45_v24 }
  0x27   :  { %v54_v28 = vsel %vm51_vm5, %v53_v22, %v49_v27  ;;  %v64_v29 = vsel %vm63_vm6, %v100_v12, %v60_v26 }
  0x28   :  { %71 = vst [vmem:[#allocation6] sm:$0xff] %v54_v28  ;;  %v69_v30 = vsel %vm66_vm7, %v68_v25, %v64_v29 }
  0x29   :  { %72 = vst [vmem:[#allocation6 + $0x8] sm:$0xff] %v69_v30 }
  0x2a   :  { %83 = dma.vmem_to_hbm [thread:$0]  %s79_s1, 256, %s81_s21, [#allocation5]  }
  0x2b   :  { %151 = dma.done.wait [#allocation5], 256  }
  0x2c   :  { %152 = vsyncadd [#allocation5], 4294967040 }
  0x2d   :  { %88 = vsyncpa [#allocation4], 1 }
  0x2e   :  { %89 = vsyncpa [#allocation5], 1 }

</bundles_post_ra>
